<compile_context>
chip_gen: v7x
topology: tpu7x:2x2x1
jax: 0.10.0
libtpu: 0.0.40
codegen_flags: <defaults>
</compile_context>

<pallas_src>
import functools

import jax
import jax.numpy as jnp
from jax.experimental import pallas as pl
from jax.experimental.pallas import tpu as pltpu

EPS = 1e-5  # torch F.group_norm default


def _round_up(x, m):
    return (x + m - 1) // m * m


def _conv_gn_relu_kernel(x_ref, w_ref, g_ref, b_ref, m_ref, o_ref,
                         *, kh, kw, w_pad, hwp, inv_count):
    # x_ref : (1, C_in, L)         flattened zero-padded input, one sample
    #                              (L = (kh-1)*w_pad + (kw-1) + hwp)
    # w_ref : (KH*KW, C_out, C_in) conv weight, one (C_out, C_in) slab per tap
    # g_ref : (C_out, 1)           group-norm gamma
    # b_ref : (C_out, 1)           group-norm beta
    # m_ref : (1, hwp)             1.0 at valid output positions, 0.0 at the
    #                              wrap-around / stride-skipped / lane-pad cols
    # o_ref : (1, C_out, hwp)      conv+GN+ReLU output on the lane-padded grid
    x = x_ref[0]                                            # (C_in, L)

    # ---- convolution: KH*KW accumulated matmuls on the MXU -----------------
    acc = None
    for i in range(kh):
        for j in range(kw):
            off = i * w_pad + j                             # static offset
            xs = x[:, off:off + hwp]                        # (C_in, hwp) contiguous
            wij = w_ref[i * kw + j]                         # (C_out, C_in)
            p = jnp.dot(wij, xs, preferred_element_type=jnp.float32)
            acc = p if acc is None else acc + p             # (C_out, hwp) f32

    # ---- GroupNorm(num_groups=1): fused masked sum / sum-of-squares --------
    mask = m_ref[...]                                       # (1, hwp)
    y = acc * mask                                          # zero garbage cols
    s = jnp.sum(y)
    s2 = jnp.sum(y * y)
    mean = s * inv_count
    var = jnp.maximum(s2 * inv_count - mean * mean, 0.0)    # biased variance
    inv_std = jax.lax.rsqrt(var + EPS)                      # EUP

    # ---- normalize + per-channel affine as a single FMA, then ReLU ---------
    scale = g_ref[...] * inv_std                            # (C_out, 1)
    shift = b_ref[...] - mean * scale                       # (C_out, 1)
    o_ref[0] = jnp.maximum(acc * scale + shift, 0.0).astype(o_ref.dtype)


def conv2d_block_forward(x, weight, gamma, beta, *, stride=1, padding=0):
    """x: (N, C_in, H, W); weight: (C_out, C_in, K, K); gamma/beta: (C_out,)."""
    n, c_in, h, w = x.shape
    c_out, _, kh, kw = weight.shape
    h_pad, w_pad = h + 2 * padding, w + 2 * padding
    h_out = (h_pad - kh) // stride + 1
    w_out = (w_pad - kw) // stride + 1
    h_full = h_pad - kh + 1            # stride-1 row extent computed in-kernel
    w_full = w_pad - kw + 1            # stride-1 valid column extent
    hwf = h_full * w_pad               # valid lane extent of the output grid
    hwp = _round_up(hwf, 128)          # lane-padded extent -> unmasked stores
    L = (kh - 1) * w_pad + (kw - 1) + hwp   # tail pad so every slice is in-bounds

    # --- host-side prep (cheap, no im2col) ----------------------------------
    x_pad = jnp.pad(x, ((0, 0), (0, 0), (padding, padding), (padding, padding)))
    x_flat = x_pad.reshape(n, c_in, h_pad * w_pad)
    x_flat = jnp.pad(x_flat, ((0, 0), (0, 0), (0, L - h_pad * w_pad)))  # (N,C_in,L)

    # (C_out, C_in, KH, KW) -> (KH*KW, C_out, C_in): one weight slab per tap.
    w_kk = jnp.transpose(weight, (2, 3, 0, 1)).reshape(kh * kw, c_out, c_in)
    w_kk = w_kk.astype(jnp.float32)
    g2 = gamma.reshape(c_out, 1).astype(jnp.float32)
    b2 = beta.reshape(c_out, 1).astype(jnp.float32)

    # Validity mask over the in-kernel (h_full, w_pad) output grid, padded to hwp:
    # keep stride-aligned rows/cols that map to real conv outputs.
    rr = jnp.arange(h_full)
    cc = jnp.arange(w_pad)
    row_ok = (rr % stride == 0) & (rr // stride < h_out)
    col_ok = (cc % stride == 0) & (cc // stride < w_out) & (cc < w_full)
    mask = (row_ok[:, None] & col_ok[None, :]).astype(jnp.float32).reshape(1, hwf)
    mask = jnp.pad(mask, ((0, 0), (0, hwp - hwf)))

    inv_count = 1.0 / float(c_out * h_out * w_out)

    kernel = functools.partial(
        _conv_gn_relu_kernel,
        kh=kh, kw=kw, w_pad=w_pad, hwp=hwp, inv_count=inv_count)

    # --- Pallas kernel: one grid step per batch element ---------------------
    out_full = pl.pallas_call(
        kernel,
        out_shape=jax.ShapeDtypeStruct((n, c_out, hwp), x.dtype),
        grid=(n,),
        in_specs=[
            pl.BlockSpec((1, c_in, L), lambda b: (b, 0, 0)),
            pl.BlockSpec((kh * kw, c_out, c_in), lambda b: (0, 0, 0)),
            pl.BlockSpec((c_out, 1), lambda b: (0, 0)),
            pl.BlockSpec((c_out, 1), lambda b: (0, 0)),
            pl.BlockSpec((1, hwp), lambda b: (0, 0)),
        ],
        out_specs=pl.BlockSpec((1, c_out, hwp), lambda b: (b, 0, 0)),
        compiler_params=pltpu.CompilerParams(
            dimension_semantics=("parallel",)),
    )(x_flat, w_kk, g2, b2, mask)                           # (N, C_out, hwp)

    # Cheap slice + free reshape straight to NCHW (no transpose).
    out_full = out_full[:, :, :hwf].reshape(n, c_out, h_full, w_pad)
    out = out_full[:, :,
                   : (h_out - 1) * stride + 1: stride,
                   : (w_out - 1) * stride + 1: stride]
    return out


def _reference(x, weight, gamma, beta, *, stride=1, padding=0):
    """Pure-JAX reference (matches torch conv -> group_norm(1) -> relu)."""
    y = jax.lax.conv_general_dilated(
        x, weight, window_strides=(stride, stride),
        padding=((padding, padding), (padding, padding)),
        dimension_numbers=("NCHW", "OIHW", "NCHW"),
    )
    n = y.shape[0]
    yf = y.reshape(n, -1)
    mean = yf.mean(axis=1, keepdims=True)
    var = ((yf - mean) ** 2).mean(axis=1, keepdims=True)
    yn = ((yf - mean) / jnp.sqrt(var + EPS)).reshape(y.shape)
    yn = yn * gamma.reshape(1, -1, 1, 1) + beta.reshape(1, -1, 1, 1)
    return jnp.maximum(yn, 0.0)


if __name__ == "__main__":
    # Module hyper-params (small, consistent with the forward pass)
    in_channels, out_channels = 4, 8
    kernel_size, stride, padding = 3, 1, 1
    N, H, W = 2, 16, 16

    key = jax.random.PRNGKey(0)
    k_x, k_w = jax.random.split(key)

    # Input
    x = jax.random.normal(k_x, (N, in_channels, H, W), dtype=jnp.float32)

    # Deterministic kaiming-uniform-style conv weight (bias=False in the module)
    fan_in = in_channels * kernel_size * kernel_size
    bound = jnp.sqrt(6.0 / fan_in)  # gain=sqrt(2) for relu: bound = sqrt(6/fan_in)
    conv_w = jax.random.uniform(
        k_w, (out_channels, in_channels, kernel_size, kernel_size),
        minval=-bound, maxval=bound, dtype=jnp.float32)

    # GroupNorm affine params: ones / zeros as in the module
    gamma = jnp.ones((out_channels,), dtype=jnp.float32)
    beta = jnp.zeros((out_channels,), dtype=jnp.float32)

    fwd = jax.jit(functools.partial(
        conv2d_block_forward, stride=stride, padding=padding))
    out = fwd(x, conv_w, gamma, beta)
    out = jax.block_until_ready(out)

    ref = _reference(x, conv_w, gamma, beta, stride=stride, padding=padding)
    assert out.shape == ref.shape, (out.shape, ref.shape)
    assert jnp.allclose(out, ref, atol=1e-4, rtol=1e-4), "mismatch vs reference"

    print("KERNEL_OK")
</pallas_src>

<mosaic_0001>
module attributes {stable_mosaic.version = 11 : i64} {
  func.func @_conv_gn_relu_kernel(%arg0: i32, %arg1: memref<1x4x422xf32, #tpu.memory_space<vmem>>, %arg2: memref<9x8x4xf32, #tpu.memory_space<vmem>>, %arg3: memref<8x1xf32, #tpu.memory_space<vmem>>, %arg4: memref<8x1xf32, #tpu.memory_space<vmem>>, %arg5: memref<1x384xf32, #tpu.memory_space<vmem>>, %arg6: memref<1x8x384xf32, #tpu.memory_space<vmem>>) attributes {dimension_semantics = [#tpu.dimension_semantics<parallel>], iteration_bounds = array<i64: 2>, scalar_prefetch = 0 : i64, scratch_operands = 0 : i64, tpu.core_type = #tpu.core_type<tc>, window_params = [{transform_indices = @transform_0, window_bounds = array<i64: 1, 4, 422>}, {pipeline_mode = #tpu.pipeline_mode<synchronous>, transform_indices = @transform_1, window_bounds = array<i64: 9, 8, 4>}, {pipeline_mode = #tpu.pipeline_mode<synchronous>, transform_indices = @transform_2, window_bounds = array<i64: 8, 1>}, {pipeline_mode = #tpu.pipeline_mode<synchronous>, transform_indices = @transform_3, window_bounds = array<i64: 8, 1>}, {pipeline_mode = #tpu.pipeline_mode<synchronous>, transform_indices = @transform_4, window_bounds = array<i64: 1, 384>}, {transform_indices = @transform_5, window_bounds = array<i64: 1, 8, 384>}]} {
    %c0 = arith.constant 0 : index
    %c0_0 = arith.constant 0 : index
    %c0_1 = arith.constant 0 : index
    %0 = vector.load %arg1[%c0, %c0_0, %c0_1] : memref<1x4x422xf32, #tpu.memory_space<vmem>>, vector<1x4x422xf32>
    %1 = vector.shape_cast %0 : vector<1x4x422xf32> to vector<4x422xf32>
    %2 = vector.extract_strided_slice %1 {offsets = [0, 0], sizes = [4, 384], strides = [1, 1]} : vector<4x422xf32> to vector<4x384xf32>
    %c0_2 = arith.constant 0 : index
    %c0_3 = arith.constant 0 : index
    %c0_4 = arith.constant 0 : index
    %3 = vector.load %arg2[%c0_2, %c0_3, %c0_4] : memref<9x8x4xf32, #tpu.memory_space<vmem>>, vector<1x8x4xf32>
    %4 = vector.shape_cast %3 : vector<1x8x4xf32> to vector<8x4xf32>
    %cst = arith.constant dense<0.000000e+00> : vector<8x384xf32>
    %5 = tpu.matmul %4, %2, %cst {dimension_numbers = #tpu.dot_dimension_numbers<[1], [0], [0], [1], [0, 0, 1, 1], [], []>} : vector<8x4xf32>, vector<4x384xf32>, vector<8x384xf32> -> vector<8x384xf32>
    %6 = vector.extract_strided_slice %1 {offsets = [0, 1], sizes = [4, 384], strides = [1, 1]} : vector<4x422xf32> to vector<4x384xf32>
    %c1 = arith.constant 1 : index
    %c0_5 = arith.constant 0 : index
    %c0_6 = arith.constant 0 : index
    %7 = vector.load %arg2[%c1, %c0_5, %c0_6] : memref<9x8x4xf32, #tpu.memory_space<vmem>>, vector<1x8x4xf32>
    %8 = vector.shape_cast %7 : vector<1x8x4xf32> to vector<8x4xf32>
    %cst_7 = arith.constant dense<0.000000e+00> : vector<8x384xf32>
    %9 = tpu.matmul %8, %6, %cst_7 {dimension_numbers = #tpu.dot_dimension_numbers<[1], [0], [0], [1], [0, 0, 1, 1], [], []>} : vector<8x4xf32>, vector<4x384xf32>, vector<8x384xf32> -> vector<8x384xf32>
    %10 = arith.addf %5, %9 : vector<8x384xf32>
    %11 = vector.extract_strided_slice %1 {offsets = [0, 2], sizes = [4, 384], strides = [1, 1]} : vector<4x422xf32> to vector<4x384xf32>
    %c2 = arith.constant 2 : index
    %c0_8 = arith.constant 0 : index
    %c0_9 = arith.constant 0 : index
    %12 = vector.load %arg2[%c2, %c0_8, %c0_9] : memref<9x8x4xf32, #tpu.memory_space<vmem>>, vector<1x8x4xf32>
    %13 = vector.shape_cast %12 : vector<1x8x4xf32> to vector<8x4xf32>
    %cst_10 = arith.constant dense<0.000000e+00> : vector<8x384xf32>
    %14 = tpu.matmul %13, %11, %cst_10 {dimension_numbers = #tpu.dot_dimension_numbers<[1], [0], [0], [1], [0, 0, 1, 1], [], []>} : vector<8x4xf32>, vector<4x384xf32>, vector<8x384xf32> -> vector<8x384xf32>
    %15 = arith.addf %10, %14 : vector<8x384xf32>
    %16 = vector.extract_strided_slice %1 {offsets = [0, 18], sizes = [4, 384], strides = [1, 1]} : vector<4x422xf32> to vector<4x384xf32>
    %c3 = arith.constant 3 : index
    %c0_11 = arith.constant 0 : index
    %c0_12 = arith.constant 0 : index
    %17 = vector.load %arg2[%c3, %c0_11, %c0_12] : memref<9x8x4xf32, #tpu.memory_space<vmem>>, vector<1x8x4xf32>
    %18 = vector.shape_cast %17 : vector<1x8x4xf32> to vector<8x4xf32>
    %cst_13 = arith.constant dense<0.000000e+00> : vector<8x384xf32>
    %19 = tpu.matmul %18, %16, %cst_13 {dimension_numbers = #tpu.dot_dimension_numbers<[1], [0], [0], [1], [0, 0, 1, 1], [], []>} : vector<8x4xf32>, vector<4x384xf32>, vector<8x384xf32> -> vector<8x384xf32>
    %20 = arith.addf %15, %19 : vector<8x384xf32>
    %21 = vector.extract_strided_slice %1 {offsets = [0, 19], sizes = [4, 384], strides = [1, 1]} : vector<4x422xf32> to vector<4x384xf32>
    %c4 = arith.constant 4 : index
    %c0_14 = arith.constant 0 : index
    %c0_15 = arith.constant 0 : index
    %22 = vector.load %arg2[%c4, %c0_14, %c0_15] : memref<9x8x4xf32, #tpu.memory_space<vmem>>, vector<1x8x4xf32>
    %23 = vector.shape_cast %22 : vector<1x8x4xf32> to vector<8x4xf32>
    %cst_16 = arith.constant dense<0.000000e+00> : vector<8x384xf32>
    %24 = tpu.matmul %23, %21, %cst_16 {dimension_numbers = #tpu.dot_dimension_numbers<[1], [0], [0], [1], [0, 0, 1, 1], [], []>} : vector<8x4xf32>, vector<4x384xf32>, vector<8x384xf32> -> vector<8x384xf32>
    %25 = arith.addf %20, %24 : vector<8x384xf32>
    %26 = vector.extract_strided_slice %1 {offsets = [0, 20], sizes = [4, 384], strides = [1, 1]} : vector<4x422xf32> to vector<4x384xf32>
    %c5 = arith.constant 5 : index
    %c0_17 = arith.constant 0 : index
    %c0_18 = arith.constant 0 : index
    %27 = vector.load %arg2[%c5, %c0_17, %c0_18] : memref<9x8x4xf32, #tpu.memory_space<vmem>>, vector<1x8x4xf32>
    %28 = vector.shape_cast %27 : vector<1x8x4xf32> to vector<8x4xf32>
    %cst_19 = arith.constant dense<0.000000e+00> : vector<8x384xf32>
    %29 = tpu.matmul %28, %26, %cst_19 {dimension_numbers = #tpu.dot_dimension_numbers<[1], [0], [0], [1], [0, 0, 1, 1], [], []>} : vector<8x4xf32>, vector<4x384xf32>, vector<8x384xf32> -> vector<8x384xf32>
    %30 = arith.addf %25, %29 : vector<8x384xf32>
    %31 = vector.extract_strided_slice %1 {offsets = [0, 36], sizes = [4, 384], strides = [1, 1]} : vector<4x422xf32> to vector<4x384xf32>
    %c6 = arith.constant 6 : index
    %c0_20 = arith.constant 0 : index
    %c0_21 = arith.constant 0 : index
    %32 = vector.load %arg2[%c6, %c0_20, %c0_21] : memref<9x8x4xf32, #tpu.memory_space<vmem>>, vector<1x8x4xf32>
    %33 = vector.shape_cast %32 : vector<1x8x4xf32> to vector<8x4xf32>
    %cst_22 = arith.constant dense<0.000000e+00> : vector<8x384xf32>
    %34 = tpu.matmul %33, %31, %cst_22 {dimension_numbers = #tpu.dot_dimension_numbers<[1], [0], [0], [1], [0, 0, 1, 1], [], []>} : vector<8x4xf32>, vector<4x384xf32>, vector<8x384xf32> -> vector<8x384xf32>
    %35 = arith.addf %30, %34 : vector<8x384xf32>
    %36 = vector.extract_strided_slice %1 {offsets = [0, 37], sizes = [4, 384], strides = [1, 1]} : vector<4x422xf32> to vector<4x384xf32>
    %c7 = arith.constant 7 : index
    %c0_23 = arith.constant 0 : index
    %c0_24 = arith.constant 0 : index
    %37 = vector.load %arg2[%c7, %c0_23, %c0_24] : memref<9x8x4xf32, #tpu.memory_space<vmem>>, vector<1x8x4xf32>
    %38 = vector.shape_cast %37 : vector<1x8x4xf32> to vector<8x4xf32>
    %cst_25 = arith.constant dense<0.000000e+00> : vector<8x384xf32>
    %39 = tpu.matmul %38, %36, %cst_25 {dimension_numbers = #tpu.dot_dimension_numbers<[1], [0], [0], [1], [0, 0, 1, 1], [], []>} : vector<8x4xf32>, vector<4x384xf32>, vector<8x384xf32> -> vector<8x384xf32>
    %40 = arith.addf %35, %39 : vector<8x384xf32>
    %41 = vector.extract_strided_slice %1 {offsets = [0, 38], sizes = [4, 384], strides = [1, 1]} : vector<4x422xf32> to vector<4x384xf32>
    %c8 = arith.constant 8 : index
    %c0_26 = arith.constant 0 : index
    %c0_27 = arith.constant 0 : index
    %42 = vector.load %arg2[%c8, %c0_26, %c0_27] : memref<9x8x4xf32, #tpu.memory_space<vmem>>, vector<1x8x4xf32>
    %43 = vector.shape_cast %42 : vector<1x8x4xf32> to vector<8x4xf32>
    %cst_28 = arith.constant dense<0.000000e+00> : vector<8x384xf32>
    %44 = tpu.matmul %43, %41, %cst_28 {dimension_numbers = #tpu.dot_dimension_numbers<[1], [0], [0], [1], [0, 0, 1, 1], [], []>} : vector<8x4xf32>, vector<4x384xf32>, vector<8x384xf32> -> vector<8x384xf32>
    %45 = arith.addf %40, %44 : vector<8x384xf32>
    %c0_29 = arith.constant 0 : index
    %c0_30 = arith.constant 0 : index
    %46 = vector.load %arg5[%c0_29, %c0_30] : memref<1x384xf32, #tpu.memory_space<vmem>>, vector<1x384xf32>
    %47 = vector.broadcast %46 : vector<1x384xf32> to vector<8x384xf32>
    %48 = arith.mulf %45, %47 : vector<8x384xf32>
    %49 = vector.shape_cast %48 : vector<8x384xf32> to vector<1x8x384xf32>
    %cst_31 = arith.constant dense<0.000000e+00> : vector<1xf32>
    %50 = vector.multi_reduction <add>, %49, %cst_31 [1, 2] : vector<1x8x384xf32> to vector<1xf32>
    %51 = vector.shape_cast %50 : vector<1xf32> to vector<1x1x1xf32>
    %52 = vector.extract %51[0, 0, 0] : f32 from vector<1x1x1xf32>
    %53 = arith.mulf %48, %48 : vector<8x384xf32>
    %54 = vector.shape_cast %53 : vector<8x384xf32> to vector<1x8x384xf32>
    %cst_32 = arith.constant dense<0.000000e+00> : vector<1xf32>
    %55 = vector.multi_reduction <add>, %54, %cst_32 [1, 2] : vector<1x8x384xf32> to vector<1xf32>
    %56 = vector.shape_cast %55 : vector<1xf32> to vector<1x1x1xf32>
    %57 = vector.extract %56[0, 0, 0] : f32 from vector<1x1x1xf32>
    %cst_33 = arith.constant 4.8828125E-4 : f32
    %58 = arith.mulf %52, %cst_33 : f32
    %cst_34 = arith.constant 4.8828125E-4 : f32
    %59 = arith.mulf %57, %cst_34 : f32
    %60 = arith.mulf %58, %58 : f32
    %61 = arith.subf %59, %60 : f32
    %cst_35 = arith.constant 0.000000e+00 : f32
    %62 = arith.maximumf %61, %cst_35 : f32
    %cst_36 = arith.constant 9.99999974E-6 : f32
    %63 = arith.addf %62, %cst_36 : f32
    %64 = math.rsqrt %63 : f32
    %c0_37 = arith.constant 0 : index
    %c0_38 = arith.constant 0 : index
    %65 = vector.load %arg3[%c0_37, %c0_38] : memref<8x1xf32, #tpu.memory_space<vmem>>, vector<8x1xf32>
    %66 = vector.broadcast %64 : f32 to vector<8x1xf32>
    %67 = arith.mulf %65, %66 : vector<8x1xf32>
    %c0_39 = arith.constant 0 : index
    %c0_40 = arith.constant 0 : index
    %68 = vector.load %arg4[%c0_39, %c0_40] : memref<8x1xf32, #tpu.memory_space<vmem>>, vector<8x1xf32>
    %69 = vector.broadcast %58 : f32 to vector<8x1xf32>
    %70 = arith.mulf %69, %67 : vector<8x1xf32>
    %71 = arith.subf %68, %70 : vector<8x1xf32>
    %72 = vector.broadcast %67 : vector<8x1xf32> to vector<8x384xf32>
    %73 = arith.mulf %45, %72 : vector<8x384xf32>
    %74 = vector.broadcast %71 : vector<8x1xf32> to vector<8x384xf32>
    %75 = arith.addf %73, %74 : vector<8x384xf32>
    %cst_41 = arith.constant 0.000000e+00 : f32
    %76 = vector.broadcast %cst_41 : f32 to vector<8x384xf32>
    %77 = arith.maximumf %75, %76 : vector<8x384xf32>
    %c0_42 = arith.constant 0 : index
    %c0_43 = arith.constant 0 : index
    %c0_44 = arith.constant 0 : index
    %78 = vector.load %arg6[%c0_42, %c0_43, %c0_44] : memref<1x8x384xf32, #tpu.memory_space<vmem>>, vector<1x8x384xf32>
    %79 = vector.shape_cast %78 : vector<1x8x384xf32> to vector<8x384xf32>
    %80 = vector.shape_cast %77 : vector<8x384xf32> to vector<1x8x384xf32>
    tpu.vector_store %arg6[%c0_42, %c0_43, %c0_44], %80 {strides = array<i32>} : memref<1x8x384xf32, #tpu.memory_space<vmem>>, vector<1x8x384xf32>,
    return
  }
  func.func @transform_0(%arg0: i32) -> (i32, i32, i32) {
    %c0_i32 = arith.constant 0 : i32
    %c0_i32_0 = arith.constant 0 : i32
    %c0_i32_1 = arith.constant 0 : i32
    return %arg0, %c0_i32, %c0_i32_0 : i32, i32, i32
  }
  func.func @transform_1(%arg0: i32) -> (i32, i32, i32) {
    %c0_i32 = arith.constant 0 : i32
    %c0_i32_0 = arith.constant 0 : i32
    %c0_i32_1 = arith.constant 0 : i32
    %c0_i32_2 = arith.constant 0 : i32
    return %c0_i32, %c0_i32_0, %c0_i32_1 : i32, i32, i32
  }
  func.func @transform_2(%arg0: i32) -> (i32, i32) {
    %c0_i32 = arith.constant 0 : i32
    %c0_i32_0 = arith.constant 0 : i32
    %c0_i32_1 = arith.constant 0 : i32
    return %c0_i32, %c0_i32_0 : i32, i32
  }
  func.func @transform_3(%arg0: i32) -> (i32, i32) {
    %c0_i32 = arith.constant 0 : i32
    %c0_i32_0 = arith.constant 0 : i32
    %c0_i32_1 = arith.constant 0 : i32
    return %c0_i32, %c0_i32_0 : i32, i32
  }
  func.func @transform_4(%arg0: i32) -> (i32, i32) {
    %c0_i32 = arith.constant 0 : i32
    %c0_i32_0 = arith.constant 0 : i32
    %c0_i32_1 = arith.constant 0 : i32
    return %c0_i32, %c0_i32_0 : i32, i32
  }
  func.func @transform_5(%arg0: i32) -> (i32, i32, i32) {
    %c0_i32 = arith.constant 0 : i32
    %c0_i32_0 = arith.constant 0 : i32
    %c0_i32_1 = arith.constant 0 : i32
    return %arg0, %c0_i32, %c0_i32_0 : i32, i32, i32
  }
}

</mosaic_0001>

<bundles_post_ra>
// kernel: conv2d_block_forward.1
= control target key start
LH: loop header
LB: loop body
LE: loop exit
PB: predicated region body
PF: predicated region fallthrough
CT: control target
= control target key end

     0   :  { %s2097_s18 = smov 0   ;;  %s2282_s0 = inlined_call_operand.vmem [shape: f32[2,4,422], index: 0, kind: input, shape index: {}]   ;;  %s2283_s1 = inlined_call_operand.vmem [shape: f32[9,8,4], index: 1, kind: input, shape index: {}]   ;;  %s2284_s2 = inlined_call_operand.vmem [shape: f32[8,1], index: 2, kind: input, shape index: {}]   ;;  %s2285_s3 = inlined_call_operand.vmem [shape: f32[8,1], index: 3, kind: input, shape index: {}]   ;;  %s2286_s4 = inlined_call_operand.vmem [shape: f32[1,384], index: 4, kind: input, shape index: {}]   ;;  %s2287_s5 = inlined_call_operand.vmem [shape: f32[2,8,384], index: 5, kind: output, shape index: {}]  }
   0x1 LB: > { %s1855_s19 = sadd.s32 4294967295, %s2053_s18   ;;  %p1859_p0 = scmp.ge.s32.totalorder %s2053_s18, 1  ;;  %s2053_s18 = sphi %s2097_s18, %s15_s18  }
   0x2   : > { %p187_p1 = scmp.lt.s32.totalorder %s2053_s18, 3 }
   0x4   : > { %p188_p2 = pnand %p1859_p0, %p187_p1 }
   0x5   : > { %p215_p3 = scmp.lt.s32.totalorder (!%p188_p2), %s1855_s19, 1  ;;  %v2055_v0 = vmov (!%p188_p2), 0.0   ;;  %vm2056_vm0 = vmmov (!%p188_p2), 0   ;;  %s2057_s24 = smov (!%p188_p2), 127   ;;  %vm242_vm1 = vcmask (!%p188_p2), 1039360   ;;  %vm250_vm2 = vcmask (!%p188_p2), 1043456  }
   0x6   : > { %191 = sbr.rel (%p188_p2) target bundleno = 841 (0x349), region = 40  ;;  %1937 = vmatprep.subr.mxu1 (!%p188_p2), %v2055_v0  ;;  %1939 = vmatprep.mubr.msk.f32.mxu1 (!%p188_p2), %vm2056_vm0, %v2055_v0  ;;  %s2058_s25 = smov (!%p188_p2), 126   ;;  %v1863_v9 = vld [vmem:[%s2283_s1 + $0x8] sm:$0xff] (!%p188_p2)  ;;  %vm246_vm3 = vcmask (!%p188_p2), 31744   ;;  %vm558_vm4 = vcmask (!%p188_p2), 1031168   ;;  %v227_v18 = vld [vmem:[%s2283_s1] sm:$0xff] (!%p188_p2) }
   0x7   : > { %321 = vmatprep.mubr.f32.mxu0 (!%p188_p2), %v2055_v0  ;;  %s2059_s26 = smov (!%p188_p2), 110   ;;  %s2060_s27 = smov (!%p188_p2), 109   ;;  %vm725_vm5 = vcmask (!%p188_p2), 900096   ;;  %v1874_v26 = vld [vmem:[%s2283_s1 + $0x10] sm:$0xff] (!%p188_p2)  ;;  %vm892_vm6 = vcmask (!%p188_p2), 891904   ;;  %v1880_v34 = vld [vmem:[%s2283_s1 + $0x18] sm:$0xff] (!%p188_p2) }
   0x8   : > { %s2061_s28 = smov (!%p188_p2), 108   ;;  %s2062_s29 = smov (!%p188_p2), 92   ;;  %vm1059_vm7 = vcmask (!%p188_p2), 883712   ;;  %v1886_v42 = vld [vmem:[%s2283_s1 + $0x20] sm:$0xff] (!%p188_p2)  ;;  %vm1226_vm8 = vcmask (!%p188_p2), 752640   ;;  %v1892_v50 = vld [vmem:[%s2283_s1 + $0x28] sm:$0xff] (!%p188_p2) }
   0x9   : > { %s2063_s30 = smov (!%p188_p2), 91   ;;  %s2064_s6 = smov (!%p188_p2), 90   ;;  %vm1393_vm9 = vcmask (!%p188_p2), 744448   ;;  %v1898_v58 = vld [vmem:[%s2283_s1 + $0x30] sm:$0xff] (!%p188_p2)  ;;  %vm1560_vm10 = vcmask (!%p188_p2), 736256  }
   0xa   : > { %s2066_s10 = smov (!%p188_p2), 0.0  }
   0xd   : > { %s2289_s19 = smov (!%p215_p3, %s1855_s19), 1 }
   0xe   : > { %s1918_s20 = sshll.u32 %s2289_s19, 4 }
   0xf   : > { %s219_s23 = scalar_lea.vmem %s2282_s0, %s1918_s20  ;;  %s2014_s20 = smul.u32 24, %s2289_s19 }
  0x10   : > { %v2115_v1 = vld [vmem:[%s219_s23] sm:$0xff]  ;;  %v2117_v2 = vld [vmem:[%s219_s23 + $0x8] sm:$0xff] }
  0x11   : > { %234 = vrot.lane.b32.xlu1 %v2115_v1, %s2057_s24  ;;  %v232_v3 = vcombine.high %v2115_v1, %v2115_v1  ;;  %v233_v4 = vcombine.high %v2117_v2, %v2117_v2  ;;  %s224_s23 = scalar_lea.vmem %s2287_s5, %s2014_s20 }
  0x13   : > { %236 = vrot.lane.b32.xlu0 %v232_v3, %s2057_s24 }
  0x15   : > { %240 = vrot.lane.b32.xlu1 %v233_v4, %s2057_s24 }
  0x17   : > { %238 = vrot.lane.b32.xlu0 %v2117_v2, %s2057_s24 }
  0x19   : > { %554 = vrot.lane.b32.xlu1 %v2117_v2, %s2058_s25 }
  0x1b   : > { %552 = vrot.lane.b32.xlu0 %v232_v3, %s2058_s25 }
  0x1d   : > { %556 = vrot.lane.b32.xlu1 %v233_v4, %s2058_s25 }
  0x1f   : > { %550 = vrot.lane.b32.xlu0 %v2115_v1, %s2058_s25 }
  0x21   : > { %721 = vrot.lane.b32.xlu1 %v2117_v2, %s2059_s26 }
  0x23   : > { %719 = vrot.lane.b32.xlu0 %v232_v3, %s2059_s26 }
  0x25   : > { %723 = vrot.lane.b32.xlu1 %v233_v4, %s2059_s26 }
  0x27   : > { %717 = vrot.lane.b32.xlu0 %v2115_v1, %s2059_s26 }
  0x29   : > { %888 = vrot.lane.b32.xlu1 %v2117_v2, %s2060_s27 }
  0x2b   : > { %886 = vrot.lane.b32.xlu0 %v232_v3, %s2060_s27 }
  0x2d   : > { %890 = vrot.lane.b32.xlu1 %v233_v4, %s2060_s27 }
  0x2f   : > { %884 = vrot.lane.b32.xlu0 %v2115_v1, %s2060_s27 }
  0x31   : > { %1055 = vrot.lane.b32.xlu1 %v2117_v2, %s2061_s28 }
  0x33   : > { %1053 = vrot.lane.b32.xlu0 %v232_v3, %s2061_s28 }
  0x35   : > { %1057 = vrot.lane.b32.xlu1 %v233_v4, %s2061_s28 }
  0x37   : > { %1051 = vrot.lane.b32.xlu0 %v2115_v1, %s2061_s28 }
  0x39   : > { %1222 = vrot.lane.b32.xlu1 %v2117_v2, %s2062_s29 }
  0x3b   : > { %1220 = vrot.lane.b32.xlu0 %v232_v3, %s2062_s29 }
  0x3d   : > { %1224 = vrot.lane.b32.xlu1 %v233_v4, %s2062_s29 }
  0x3f   : > { %1218 = vrot.lane.b32.xlu0 %v2115_v1, %s2062_s29 }
  0x41   : > { %1389 = vrot.lane.b32.xlu1 %v2117_v2, %s2063_s30 }
  0x43   : > { %1387 = vrot.lane.b32.xlu0 %v232_v3, %s2063_s30 }
  0x45   : > { %1391 = vrot.lane.b32.xlu1 %v233_v4, %s2063_s30 }
  0x47   : > { %1385 = vrot.lane.b32.xlu0 %v2115_v1, %s2063_s30 }
  0x49   : > { %1556 = vrot.lane.b32.xlu1 %v2117_v2, %s2064_s6 }
  0x4b   : > { %1554 = vrot.lane.b32.xlu0 %v232_v3, %s2064_s6 }
  0x4d   : > { %1558 = vrot.lane.b32.xlu1 %v233_v4, %s2064_s6 }
  0x4f   : > { %1552 = vrot.lane.b32.xlu0 %v2115_v1, %s2064_s6 }
  0x83   : > { %v235_v5 = vpop.permute.xlu1 %234 }
  0x85   : > { %v237_v6 = vpop.permute.xlu0 %236 }
  0x86   : > { %v243_v12 = vsel %vm242_vm1, %v235_v5, %v237_v6 }
  0x87   : > { %v241_v7 = vpop.permute.xlu1 %240 }
  0x89   : > { %v239_v8 = vpop.permute.xlu0 %238 }
  0x8a   : > { %v244_v10 = vsel %vm242_vm1, %v237_v6, %v239_v8  ;;  %v245_v11 = vsel %vm242_vm1, %v239_v8, %v241_v7  ;;  %v1910_v6 = vld [vmem:[%s2283_s1 + $0x40] sm:$0xff]  ;;  %v1719_v7 = vlaneseq }
  0x8b   : > { %1864 = vmatprep.subr.msk.mxu0 %vm250_vm2, %v244_v10  ;;  %1938 = vmatpush3.msk.msra.mxu1 %vm250_vm2, %v245_v11  ;;  %v555_v13 = vpop.permute.xlu1 %554  ;;  %v1717_v10 = vld [vmem:[%s2286_s4] sm:$0x7] }
  0x8c   : > { %1865 = vmatpush1.msk.msra.mxu0 %vm250_vm2, %v243_v12  ;;  %1940 = vmatmul.mubr.msk.f32.vlgmr.msra.gmra.mrb[0].mxu1 %vm246_vm3, %v1863_v9  ;;  %v1720_v8 = vshrl.u32 %v1719_v7, 7 }
  0x8d   : > { %1866 = vmatmul.mubr.msk.f32.vlgmr.msra.gmra.mrb[0].mxu0 %vm246_vm3, %v1863_v9  ;;  %1869 = vmatprep.subr.msk.mxu0 %vm250_vm2, %v232_v3  ;;  %v553_v14 = vpop.permute.xlu0 %552  ;;  %v1904_v3 = vld [vmem:[%s2283_s1 + $0x38] sm:$0xff] }
  0x8e   : > { %1870 = vmatpush1.msk.msra.mxu0 %vm250_vm2, %v2115_v1  ;;  %v560_v15 = vsel %vm558_vm4, %v553_v14, %v555_v13  ;;  %1942 = vmatprep.subr.mxu1 %v2055_v0  ;;  %v1721_v9 = vsub.s32 0, %v1720_v8  ;;  %v1729_v11 = vsub.s32 2, %v1720_v8  ;;  %v1725_v12 = vsub.s32 1, %v1720_v8 }
  0x8f   : > { %1943 = vmatpush3.msk.msra.mxu1 %vm250_vm2, %v2117_v2  ;;  %1875 = vmatprep.subr.msk.mxu0 %vm250_vm2, %v560_v15  ;;  %v557_v16 = vpop.permute.xlu1 %556 }
  0x90   : > { %1944 = vmatprep.mubr.msk.f32.mxu1 %vm2056_vm0, %v2055_v0  ;;  %471 = vmatprep.mubr.f32.mxu0 %v2055_v0  ;;  %v561_v19 = vsel %vm558_vm4, %v555_v13, %v557_v16  ;;  %v1722_v13 = vrot.slane %v1717_v10, %v1721_v9 }
  0x91   : > { %v551_v17 = vpop.permute.xlu0 %550  ;;  %1947 = vmatprep.subr.mxu1 %v2055_v0 }
  0x92   : > { %v559_v20 = vsel %vm558_vm4, %v551_v17, %v553_v14  ;;  %v1730_v14 = vrot.slane %v1717_v10, %v1729_v11 }
  0x93   : > { %v722_v21 = vpop.permute.xlu1 %721 }
  0x94   : > { %1945 = vmatmul.mubr.msk.f32.vlgmr.msra.gmra.mrb[0].mxu1 %vm246_vm3, %v227_v18 }
  0x95   : > { %1871 = vmatmul.mubr.msk.f32.vlgmr.msra.gmra.mrb[0].mxu0 %vm246_vm3, %v227_v18  ;;  %1948 = vmatpush3.msk.msra.mxu1 %vm250_vm2, %v561_v19  ;;  %v720_v22 = vpop.permute.xlu0 %719 }
  0x96   : > { %1876 = vmatpush1.msk.msra.mxu0 %vm250_vm2, %v559_v20  ;;  %v727_v23 = vsel %vm725_vm5, %v720_v22, %v722_v21  ;;  %1949 = vmatprep.mubr.msk.f32.mxu1 %vm2056_vm0, %v2055_v0 }
  0x97   : > { %1881 = vmatprep.subr.msk.mxu0 %vm250_vm2, %v727_v23  ;;  %v724_v24 = vpop.permute.xlu1 %723  ;;  %635 = vmatprep.mubr.f32.mxu0 %v2055_v0 }
  0x98   : > { %1952 = vmatprep.subr.mxu1 %v2055_v0  ;;  %v728_v27 = vsel %vm725_vm5, %v722_v21, %v724_v24 }
  0x99   : > { %v718_v25 = vpop.permute.xlu0 %717 }
  0x9a   : > { %v726_v28 = vsel %vm725_vm5, %v718_v25, %v720_v22 }
  0x9b   : > { %v889_v29 = vpop.permute.xlu1 %888 }
  0x9c   : > { %1950 = vmatmul.mubr.msk.f32.vlgmr.msra.gmra.mrb[0].mxu1 %vm246_vm3, %v1874_v26 }
  0x9d   : > { %1877 = vmatmul.mubr.msk.f32.vlgmr.msra.gmra.mrb[0].mxu0 %vm246_vm3, %v1874_v26  ;;  %1953 = vmatpush3.msk.msra.mxu1 %vm250_vm2, %v728_v27  ;;  %v887_v30 = vpop.permute.xlu0 %886 }
  0x9e   : > { %1882 = vmatpush1.msk.msra.mxu0 %vm250_vm2, %v726_v28  ;;  %v894_v31 = vsel %vm892_vm6, %v887_v30, %v889_v29  ;;  %1954 = vmatprep.mubr.msk.f32.mxu1 %vm2056_vm0, %v2055_v0 }
  0x9f   : > { %1887 = vmatprep.subr.msk.mxu0 %vm250_vm2, %v894_v31  ;;  %v891_v32 = vpop.permute.xlu1 %890  ;;  %802 = vmatprep.mubr.f32.mxu0 %v2055_v0 }
  0xa0   : > { %1957 = vmatprep.subr.mxu1 %v2055_v0  ;;  %v895_v35 = vsel %vm892_vm6, %v889_v29, %v891_v32 }
  0xa1   : > { %v885_v33 = vpop.permute.xlu0 %884 }
  0xa2   : > { %v893_v36 = vsel %vm892_vm6, %v885_v33, %v887_v30 }
  0xa3   : > { %v1056_v37 = vpop.permute.xlu1 %1055 }
  0xa4   : > { %1955 = vmatmul.mubr.msk.f32.vlgmr.msra.gmra.mrb[0].mxu1 %vm246_vm3, %v1880_v34 }
  0xa5   : > { %1883 = vmatmul.mubr.msk.f32.vlgmr.msra.gmra.mrb[0].mxu0 %vm246_vm3, %v1880_v34  ;;  %1958 = vmatpush3.msk.msra.mxu1 %vm250_vm2, %v895_v35  ;;  %v1054_v38 = vpop.permute.xlu0 %1053 }
  0xa6   : > { %1888 = vmatpush1.msk.msra.mxu0 %vm250_vm2, %v893_v36  ;;  %v1061_v39 = vsel %vm1059_vm7, %v1054_v38, %v1056_v37  ;;  %1959 = vmatprep.mubr.msk.f32.mxu1 %vm2056_vm0, %v2055_v0 }
  0xa7   : > { %1893 = vmatprep.subr.msk.mxu0 %vm250_vm2, %v1061_v39  ;;  %v1058_v40 = vpop.permute.xlu1 %1057  ;;  %969 = vmatprep.mubr.f32.mxu0 %v2055_v0 }
  0xa8   : > { %1962 = vmatprep.subr.mxu1 %v2055_v0  ;;  %v1062_v43 = vsel %vm1059_vm7, %v1056_v37, %v1058_v40  ;;  %v2065_v40 = vmov 0  }
  0xa9   : > { %v1052_v41 = vpop.permute.xlu0 %1051  ;;  %2041 = vset.pattern.permute.xlu0 %v2065_v40  ;;  %2042 = vset.pattern.permute.xlu1 %v2065_v40 }
  0xaa   : > { %v1060_v44 = vsel %vm1059_vm7, %v1052_v41, %v1054_v38 }
  0xab   : > { %v1223_v45 = vpop.permute.xlu1 %1222 }
  0xac   : > { %1960 = vmatmul.mubr.msk.f32.vlgmr.msra.gmra.mrb[0].mxu1 %vm246_vm3, %v1886_v42 }
  0xad   : > { %1889 = vmatmul.mubr.msk.f32.vlgmr.msra.gmra.mrb[0].mxu0 %vm246_vm3, %v1886_v42  ;;  %1963 = vmatpush3.msk.msra.mxu1 %vm250_vm2, %v1062_v43  ;;  %v1221_v46 = vpop.permute.xlu0 %1220 }
  0xae   : > { %1894 = vmatpush1.msk.msra.mxu0 %vm250_vm2, %v1060_v44  ;;  %v1228_v47 = vsel %vm1226_vm8, %v1221_v46, %v1223_v45  ;;  %1964 = vmatprep.mubr.msk.f32.mxu1 %vm2056_vm0, %v2055_v0 }
  0xaf   : > { %1899 = vmatprep.subr.msk.mxu0 %vm250_vm2, %v1228_v47  ;;  %v1225_v48 = vpop.permute.xlu1 %1224  ;;  %1136 = vmatprep.mubr.f32.mxu0 %v2055_v0 }
  0xb0   : > { %1967 = vmatprep.subr.mxu1 %v2055_v0  ;;  %v1229_v51 = vsel %vm1226_vm8, %v1223_v45, %v1225_v48 }
  0xb1   : > { %v1219_v49 = vpop.permute.xlu0 %1218 }
  0xb2   : > { %v1227_v52 = vsel %vm1226_vm8, %v1219_v49, %v1221_v46  ;;  %v1771_v46 = vld [vmem:[%s2284_s2] sm:$0xff] }
  0xb3   : > { %v1390_v53 = vpop.permute.xlu1 %1389 }
  0xb4   : > { %1965 = vmatmul.mubr.msk.f32.vlgmr.msra.gmra.mrb[0].mxu1 %vm246_vm3, %v1892_v50 }
  0xb5   : > { %1895 = vmatmul.mubr.msk.f32.vlgmr.msra.gmra.mrb[0].mxu0 %vm246_vm3, %v1892_v50  ;;  %1968 = vmatpush3.msk.msra.mxu1 %vm250_vm2, %v1229_v51  ;;  %v1388_v54 = vpop.permute.xlu0 %1387  ;;  %v1774_v50 = vld [vmem:[%s2285_s3] sm:$0xff] }
  0xb6   : > { %1900 = vmatpush1.msk.msra.mxu0 %vm250_vm2, %v1227_v52  ;;  %v1395_v55 = vsel %vm1393_vm9, %v1388_v54, %v1390_v53  ;;  %1969 = vmatprep.mubr.msk.f32.mxu1 %vm2056_vm0, %v2055_v0 }
  0xb7   : > { %1905 = vmatprep.subr.msk.mxu0 %vm250_vm2, %v1395_v55  ;;  %v1392_v56 = vpop.permute.xlu1 %1391  ;;  %1303 = vmatprep.mubr.f32.mxu0 %v2055_v0 }
  0xb8   : > { %1972 = vmatprep.subr.mxu1 %v2055_v0  ;;  %v1396_v59 = vsel %vm1393_vm9, %v1390_v53, %v1392_v56 }
  0xb9   : > { %v1386_v57 = vpop.permute.xlu0 %1385 }
  0xba   : > { %v1394_v60 = vsel %vm1393_vm9, %v1386_v57, %v1388_v54 }
  0xbb   : > { %v1557_v61 = vpop.permute.xlu1 %1556 }
  0xbc   : > { %1970 = vmatmul.mubr.msk.f32.vlgmr.msra.gmra.mrb[0].mxu1 %vm246_vm3, %v1898_v58 }
  0xbd   : > { %1901 = vmatmul.mubr.msk.f32.vlgmr.msra.gmra.mrb[0].mxu0 %vm246_vm3, %v1898_v58  ;;  %1973 = vmatpush3.msk.msra.mxu1 %vm250_vm2, %v1396_v59  ;;  %v1555_v62 = vpop.permute.xlu0 %1554 }
  0xbe   : > { %1906 = vmatpush1.msk.msra.mxu0 %vm250_vm2, %v1394_v60  ;;  %v1562_v63 = vsel %vm1560_vm10, %v1555_v62, %v1557_v61  ;;  %1974 = vmatprep.mubr.msk.f32.mxu1 %vm2056_vm0, %v2055_v0 }
  0xbf   : > { %1911 = vmatprep.subr.msk.mxu0 %vm250_vm2, %v1562_v63  ;;  %v1559_v1 = vpop.permute.xlu1 %1558  ;;  %1470 = vmatprep.mubr.f32.mxu0 %v2055_v0 }
  0xc0   : > { %1977 = vmatprep.subr.mxu1 %v2055_v0  ;;  %v1563_v4 = vsel %vm1560_vm10, %v1557_v61, %v1559_v1 }
  0xc1   : > { %v1553_v2 = vpop.permute.xlu0 %1552 }
  0xc2   : > { %v1561_v5 = vsel %vm1560_vm10, %v1553_v2, %v1555_v62 }
  0xc4   : > { %1975 = vmatmul.mubr.msk.f32.vlgmr.msra.gmra.mrb[0].mxu1 %vm246_vm3, %v1904_v3 }
  0xc5   : > { %1907 = vmatmul.mubr.msk.f32.vlgmr.msra.gmra.mrb[0].mxu0 %vm246_vm3, %v1904_v3  ;;  %1978 = vmatpush3.msk.msra.mxu1 %vm250_vm2, %v1563_v4 }
  0xc6   : > { %1912 = vmatpush1.msk.msra.mxu0 %vm250_vm2, %v1561_v5  ;;  %1979 = vmatprep.mubr.msk.f32.mxu1 %vm2056_vm0, %v2055_v0 }
  0xc7   : > { %1637 = vmatprep.mubr.f32.mxu0 %v2055_v0  ;;  %v1726_v0 = vrot.slane %v1717_v10, %v1725_v12 }
  0xcc   : > { %1980 = vmatmul.mubr.msk.f32.vlgmr.msra.gmra.mrb[0].mxu1 %vm246_vm3, %v1910_v6 }
  0xcd   : > { %1913 = vmatmul.mubr.msk.f32.vlgmr.msra.gmra.mrb[0].mxu0 %vm246_vm3, %v1910_v6 }
 0x19f   : > { %v1710_v15 = vpop.f32.mrb[0].mxu1 }
 0x1a0   : > { %v1639_v16 = vpop.f32.mrb[0].mxu0  ;;  %v1981_v17 = vpop.f32.mrb[1].mxu1  ;;  %v1736_v20 = vmul.f32 %v1730_v14, %v1710_v15 }
 0x1a1   : > { %v1734_v18 = vmul.f32 %v1722_v13, %v1639_v16  ;;  %v1641_v19 = vpop.f32.mrb[1].mxu0 }
 0x1a2   : > { %v1735_v21 = vmul.f32 %v1726_v0, %v1641_v19  ;;  %v1750_v26 = vmul.f32 %v1736_v20, %v1736_v20 }
 0x1a3   : > { %v1748_v22 = vmul.f32 %v1734_v18, %v1734_v18 }
 0x1a4   : > { %v1737_v23 = vadd.f32 %v1735_v21, %v1734_v18  ;;  %v1749_v24 = vmul.f32 %v1735_v21, %v1735_v21 }
 0x1a6   : > { %v1738_v25 = vadd.f32 %v1737_v23, %v1736_v20  ;;  %v1751_v27 = vadd.f32 %v1749_v24, %v1748_v22 }
 0x1a8   : > { %1739 = vadd.xlane.f32.xlu0 %v1738_v25  ;;  %v1752_v28 = vadd.f32 %v1751_v27, %v1750_v26 }
 0x1aa   : > { %1753 = vadd.xlane.f32.xlu1 %v1752_v28 }
 0x235   : > { %v1740_v29 = vpop.xlane.xlu0 %1739 }
 0x236   : > { %v1741_v30 = vrot.slane %v1740_v29, 4 }
 0x237   : > { %v1754_v31 = vpop.xlane.xlu1 %1753 }
 0x238   : > { %v1742_v32 = vadd.f32 %v1741_v30, %v1740_v29  ;;  %v1755_v33 = vrot.slane %v1754_v31, 4 }
 0x23a   : > { %v1743_v34 = vrot.slane %v1742_v32, 2  ;;  %v1756_v35 = vadd.f32 %v1755_v33, %v1754_v31 }
 0x23c   : > { %v1757_v36 = vrot.slane %v1756_v35, 2  ;;  %v1744_v37 = vadd.f32 %v1743_v34, %v1742_v32 }
 0x23e   : > { %v1745_v38 = vrot.slane %v1744_v37, 1  ;;  %v1758_v39 = vadd.f32 %v1757_v36, %v1756_v35 }
 0x240   : > { %v1746_v41 = vadd.f32 %v1745_v38, %v1744_v37  ;;  %v1759_v42 = vrot.slane %v1758_v39, 1 }
 0x242   : > { %2015 = vpush %v1746_v41  ;;  %v1760_v43 = vadd.f32 %v1759_v42, %v1758_v39 }
 0x244   : > { %2017 = vpush %v1760_v43 }
 0x273   : > { %s2016_s29 = spop %2015 }
 0x274   : > { %s1762_s30 = smul.f32 0.00048828125, %s2016_s29 }
 0x275   : > { %s2018_s6 = spop %2017 }
 0x276   : > { %s1764_s7 = smul.f32 %s1762_s30, %s1762_s30  ;;  %v1775_v49 = vstv %s1762_s30 }
 0x277   : > { %s1763_s8 = smul.f32 0.00048828125, %s2018_s6 }
 0x279   : > { %s1765_s9 = ssub.f32 %s1763_s8, %s1764_s7 }
 0x27b   : > { %s1766_s11 = smax.f32 %s2066_s10, %s1765_s9 }
 0x27c   : > { %s1767_s12 = sadd.f32 1e-05, %s1766_s11 }
 0x27e   : > { %v1768_v44 = vstv %s1767_s12 }
 0x27f   : > { %2045 = vrsqrt.f32 %v1768_v44 }
 0x289   : > { %v2046_v45 = vpop.eup %2045 }
 0x28a   : > { %2019 = vpush %v2046_v45 }
 0x2bb   : > { %s2020_s15 = spop %2019 }
 0x2bc   : > { %v1772_v47 = vstv %s2020_s15 }
 0x2bd   : > { %v1773_v48 = vmul.f32 %v1772_v47, %v1771_v46 }
 0x2bf   : > { %v1776_v51 = vmul.f32 %v1775_v49, %v1773_v48  ;;  %1780 = vperm.xlu0 %2041, %v1773_v48  }
 0x2c1   : > { %v1777_v52 = vsub.f32 %v1774_v50, %v1776_v51 }
 0x2c3   : > { %1788 = vperm.xlu1 %2042, %v1777_v52  }
 0x33e   : > { %v1781_v53 = vpop.permute.xlu0 %1780 }
 0x33f   : > { %v1783_v54 = vmul.f32 %v1781_v53, %v1639_v16  ;;  %v1784_v55 = vmul.f32 %v1781_v53, %v1641_v19  ;;  %v1785_v56 = vmul.f32 %v1781_v53, %v1710_v15 }
 0x342   : > { %v1789_v57 = vpop.permute.xlu1 %1788 }
 0x343   : > { %v1791_v58 = vadd.f32 %v1789_v57, %v1783_v54  ;;  %v1792_v59 = vadd.f32 %v1789_v57, %v1784_v55  ;;  %v1793_v60 = vadd.f32 %v1789_v57, %v1785_v56 }
 0x345   : > { %v1794_v61 = vmax.f32 %v1791_v58, 0.0  ;;  %v1795_v62 = vmax.f32 %v1792_v59, 0.0  ;;  %v1796_v63 = vmax.f32 %v1793_v60, 0.0 }
 0x347   : > { %1797 = vst [vmem:[%s224_s23] sm:$0xff] %v1794_v61  ;;  %1798 = vst [vmem:[%s224_s23 + $0x8] sm:$0xff] %v1795_v62 }
 0x348   : > { %1799 = vst [vmem:[%s224_s23 + $0x10] sm:$0xff] %v1796_v63 }
 0x349 PF: > { %s15_s18 = sadd.s32 1, %s2053_s18  }
 0x34a   : > { %p12_p4 = scmp.ge.s32.totalorder %s15_s18, 4  }
 0x34c   :  { %14 = sbr.rel (!%p12_p4) target bundleno = 1 (0x1), region = 78 }

</bundles_post_ra>
